<compile_context>
chip_gen: v6e
topology: v6e:2x2x1
jax: 0.10.0
libtpu: 0.0.40
codegen_flags: <defaults>
</compile_context>

<pallas_src>
from functools import partial

import numpy as np
import jax
import jax.numpy as jnp
from jax.experimental import pallas as pl
from jax.experimental.pallas import tpu as pltpu


VMEM_LIMIT = 48 * 1024 * 1024     # explicit scoped-VMEM cap (v5e default is 16 MiB)


def _round_up(x, m):
    return ((x + m - 1) // m) * m


def _pick_row_tile(n, row_tile):
    """Row tile: multiple of 16 (bf16 sublane packing), >=2 grid steps when
    possible (v7x has 2 TensorCores sharded over 'parallel' grid axes)."""
    if n <= 16:
        return n                                   # single full block
    return int(min(row_tile, _round_up(-(-n // 2), 16)))


# ----------------------------------------------------------------------------
# Generic fused MLP kernel:  layer_i: y = [LeakyReLU_{0.1}] (h @ W_i + b_i)
# Eval-mode BatchNorm affines (applied AFTER the activation, as in the PyTorch
# module: Linear -> LeakyReLU -> BatchNorm1d) are folded into the *next*
# layer's weights at trace time.  Activations are cast to bf16 *inside* the
# kernel (no standalone XLA convert pass); intermediates never leave VMEM.
# ----------------------------------------------------------------------------
def _mlp_kernel(*refs, acts, compute_dtype):
    x_ref = refs[0]
    o_ref = refs[-1]
    n_layers = len(acts)
    h = x_ref[...].astype(compute_dtype)
    for li in range(n_layers):
        w_ref = refs[1 + 2 * li]
        b_ref = refs[2 + 2 * li]
        y = jnp.dot(h, w_ref[...], preferred_element_type=jnp.float32) + b_ref[...]
        if acts[li]:
            y = jnp.where(y >= 0.0, y, 0.1 * y)            # LeakyReLU(0.1)
        h = y if li == n_layers - 1 else y.astype(compute_dtype)
    o_ref[...] = h.astype(o_ref.dtype)


def _fold_bn(layers):
    """Fold post-activation affine (y * s + t) of layer i into layer i+1."""
    folded = []
    ps, pt = None, None
    for lyr in layers:
        w = jnp.asarray(lyr['w'], jnp.float32)
        b = jnp.asarray(lyr['b'], jnp.float32)
        if ps is not None:
            b = b + pt @ w                  # (a*s + t) @ W = a @ (diag(s) W) + t @ W
            w = ps[:, None] * w
        folded.append({'w': w, 'b': b, 'act': bool(lyr.get('act', False))})
        if lyr.get('bn_scale', None) is not None:
            ps = jnp.asarray(lyr['bn_scale'], jnp.float32)
            pt = jnp.asarray(lyr['bn_shift'], jnp.float32)
        else:
            ps, pt = None, None
    assert ps is None, "BatchNorm after the final layer is not supported here"
    return folded


def fused_mlp(x, layers, *, row_tile=1024, col_tile=None,
              compute_dtype=jnp.bfloat16, out_dtype=jnp.float32):
    """Row-tiled fused MLP chain in a single pallas_call.

    layers: list of dicts {'w': (cin, cout), 'b': (cout,), 'act': bool,
            optional post-activation 'bn_scale'/'bn_shift'}.
    col_tile (multiple of 128): column-tiles a single-layer call's output —
            used for very wide, lane-dense outputs (img_conv).
    """
    layers = _fold_bn(layers)
    n_layers = len(layers)
    acts = tuple(l['act'] for l in layers)

    x = jnp.asarray(x)
    n, cin = x.shape
    cout = layers[-1]['w'].shape[1]
    assert layers[0]['w'].shape[0] == cin

    wb = []
    for l in layers:
        wb.append(l['w'].astype(compute_dtype))
        wb.append(l['b'].reshape(1, -1).astype(jnp.float32))

    rt = _pick_row_tile(n, row_tile)
    grid_r = pl.cdiv(n, rt)

    kern = partial(_mlp_kernel, acts=acts, compute_dtype=compute_dtype)

    use_col_tile = (n_layers == 1 and col_tile is not None and col_tile < cout)
    if use_col_tile:
        assert col_tile % 128 == 0
        ct = col_tile
        grid = (grid_r, pl.cdiv(cout, ct))
        in_specs = [pl.BlockSpec((rt, cin), lambda i, j: (i, 0)),
                    pl.BlockSpec((cin, ct), lambda i, j: (0, j)),
                    pl.BlockSpec((1, ct), lambda i, j: (0, j))]
        out_spec = pl.BlockSpec((rt, ct), lambda i, j: (i, j))
        dims = ("parallel", "parallel")
    else:
        grid = (grid_r,)
        in_specs = [pl.BlockSpec((rt, cin), lambda i: (i, 0))]
        for w_a, b_a in zip(wb[0::2], wb[1::2]):
            in_specs.append(pl.BlockSpec(w_a.shape, lambda i: (0, 0)))
            in_specs.append(pl.BlockSpec(b_a.shape, lambda i: (0, 0)))
        out_spec = pl.BlockSpec((rt, cout), lambda i: (i, 0))
        dims = ("parallel",)

    return pl.pallas_call(
        kern,
        out_shape=jax.ShapeDtypeStruct((n, cout), out_dtype),
        grid=grid,
        in_specs=in_specs,
        out_specs=out_spec,
        compiler_params=pltpu.CompilerParams(
            dimension_semantics=dims, vmem_limit_bytes=VMEM_LIMIT),
    )(x, *wb)


def fused_linear(x, w, b=None, act=False, **kw):
    cout = w.shape[1]
    b = jnp.zeros((cout,), jnp.float32) if b is None else b
    return fused_mlp(x, [dict(w=w, b=b, act=act)], **kw)


# ----------------------------------------------------------------------------
# point_encoder: layer_in + concat + layer_out fused into ONE pallas_call.
#   [identity | h] @ W0 = identity @ W0_top + h @ W0_bot
# identity is recomputed on the gathered rows (row-wise op => identical), so
# the (N,64) identity, the (N,128) concat and its gathered copy never hit HBM.
# ----------------------------------------------------------------------------
def _pe_out_kernel(fg_ref, hg_ref, w_in_ref, b_in_ref, w0t_ref, w0b_ref,
                   b0_ref, w1_ref, b1_ref, o_ref, *, compute_dtype):
    x = fg_ref[...].astype(compute_dtype)
    ident = jnp.dot(x, w_in_ref[...], preferred_element_type=jnp.float32) + b_in_ref[...]
    ident = jnp.where(ident >= 0.0, ident, 0.1 * ident)          # layer_in LeakyReLU
    h = hg_ref[...].astype(compute_dtype)
    y = (jnp.dot(ident.astype(compute_dtype), w0t_ref[...],
                 preferred_element_type=jnp.float32)
         + jnp.dot(h, w0b_ref[...], preferred_element_type=jnp.float32)
         + b0_ref[...])
    y = jnp.where(y >= 0.0, y, 0.1 * y)                          # layer_out[0] LeakyReLU
    out = jnp.dot(y.astype(compute_dtype), w1_ref[...],
                  preferred_element_type=jnp.float32) + b1_ref[...]
    o_ref[...] = out.astype(o_ref.dtype)


def pe_layer_out_fused(feat_g, hpp_g, pe, *, row_tile=1024,
                       compute_dtype=jnp.bfloat16, out_dtype=jnp.float32):
    n, c = feat_g.shape
    c2 = hpp_g.shape[1]

    w_in = jnp.asarray(pe['layer_in']['w'], jnp.float32).astype(compute_dtype)
    b_in = jnp.asarray(pe['layer_in']['b'], jnp.float32).reshape(1, -1)
    w0 = jnp.asarray(pe['out0']['w'], jnp.float32)               # (c + c2, c)
    w0t = w0[:c].astype(compute_dtype)
    w0b = w0[c:].astype(compute_dtype)
    b0 = jnp.asarray(pe['out0']['b'], jnp.float32).reshape(1, -1)
    w1 = jnp.asarray(pe['out1']['w'], jnp.float32).astype(compute_dtype)
    b1 = jnp.asarray(pe['out1']['b'], jnp.float32).reshape(1, -1)
    cout = w1.shape[1]

    rt = _pick_row_tile(n, row_tile)
    grid = (pl.cdiv(n, rt),)
    row = lambda i: (i, 0)
    full = lambda i: (0, 0)

    return pl.pallas_call(
        partial(_pe_out_kernel, compute_dtype=compute_dtype),
        out_shape=jax.ShapeDtypeStruct((n, cout), out_dtype),
        grid=grid,
        in_specs=[pl.BlockSpec((rt, c), row),
                  pl.BlockSpec((rt, c2), row),
                  pl.BlockSpec(w_in.shape, full),
                  pl.BlockSpec(b_in.shape, full),
                  pl.BlockSpec(w0t.shape, full),
                  pl.BlockSpec(w0b.shape, full),
                  pl.BlockSpec(b0.shape, full),
                  pl.BlockSpec(w1.shape, full),
                  pl.BlockSpec(b1.shape, full)],
        out_specs=pl.BlockSpec((rt, cout), row),
        compiler_params=pltpu.CompilerParams(
            dimension_semantics=("parallel",), vmem_limit_bytes=VMEM_LIMIT),
    )(feat_g, hpp_g, w_in, b_in, w0t, w0b, b0, w1, b1)


# ----------------------------------------------------------------------------
# MaxPool2d(16, 16): pure-reshape input layout (no XLA transpose copy), one
# grid step per (batch, channel), full k*k window reduced in-kernel.
# ----------------------------------------------------------------------------
def _maxpool_kernel(x_ref, o_ref):
    t = x_ref[...]                        # (ho, k, wo, k)
    m = jnp.max(t, axis=3)                # reduce window cols  -> (ho, k, wo)
    o_ref[...] = jnp.max(m, axis=1)       # reduce window rows  -> (ho, wo)


def maxpool2d_nchw(x, k=16):
    """nn.MaxPool2d(kernel_size=16, stride=16) on NCHW input."""
    b, c, h, w = x.shape
    ho, wo = h // k, w // k
    xr = x.reshape(b * c, ho, k, wo, k)        # pure reshape — no data movement
    out = pl.pallas_call(
        _maxpool_kernel,
        out_shape=jax.ShapeDtypeStruct((b * c, ho, wo), x.dtype),
        grid=(b * c,),
        in_specs=[pl.BlockSpec((None, ho, k, wo, k), lambda n: (n, 0, 0, 0, 0))],
        out_specs=pl.BlockSpec((None, ho, wo), lambda n: (n, 0, 0)),
        compiler_params=pltpu.CompilerParams(
            dimension_semantics=("parallel",), vmem_limit_bytes=VMEM_LIMIT),
    )(xr)
    return out.reshape(b, c, ho, wo)


# ----------------------------------------------------------------------------
# torch_scatter.scatter_mean: O(N*C) segment reduction (no dense one-hot).
# TODO(synk): replace with a sorted-segment Pallas reduction (sort by inv +
#             PrefetchScalarGridSpec per-segment offsets + VMEM accumulator).
# ----------------------------------------------------------------------------
def segment_mean(feats, seg_ids, num_segments):
    feats = jnp.asarray(feats, jnp.float32)
    seg_ids = jnp.asarray(seg_ids, jnp.int32)
    sums = jax.ops.segment_sum(feats, seg_ids, num_segments=num_segments)
    counts = jax.ops.segment_sum(jnp.ones((feats.shape[0],), jnp.float32),
                                 seg_ids, num_segments=num_segments)
    return sums / jnp.maximum(counts, 1.0)[:, None]


# ----------------------------------------------------------------------------
# Deterministic parameter construction (no checkpoint available).
# ----------------------------------------------------------------------------
def _linear_params(key, cin, cout):
    kw, kb = jax.random.split(key)
    w = jax.random.normal(kw, (cin, cout), jnp.float32) * (1.0 / np.sqrt(cin))
    b = jax.random.normal(kb, (cout,), jnp.float32) * 0.01
    return {'w': w, 'b': b}


def _bn_params(key, c, eps=1e-5):
    kg, kb = jax.random.split(key)
    gamma = 1.0 + 0.1 * jax.random.normal(kg, (c,), jnp.float32)
    beta = 0.05 * jax.random.normal(kb, (c,), jnp.float32)
    running_mean = jnp.zeros((c,), jnp.float32)
    running_var = jnp.ones((c,), jnp.float32)
    scale = gamma / jnp.sqrt(running_var + eps)          # eval-mode BatchNorm1d
    shift = beta - running_mean * scale
    return {'scale': scale, 'shift': shift}


def build_params(key, hidden=64, embed_dim=32, decoder_embed_dim=32, num_patches=4):
    ks = jax.random.split(key, 16)
    params = {}
    # point_encoder(in=hidden, out=hidden, scale=2)
    params['pe'] = {
        'layer_in': _linear_params(ks[0], hidden, hidden),
        'pp0': _linear_params(ks[1], hidden, hidden // 2),
        'bn0': _bn_params(ks[2], hidden // 2),
        'pp1': _linear_params(ks[3], hidden // 2, hidden // 2),
        'bn1': _bn_params(ks[4], hidden // 2),
        'pp2': _linear_params(ks[5], hidden // 2, hidden),
        'out0': _linear_params(ks[6], 2 * hidden, hidden),
        'out1': _linear_params(ks[7], hidden, hidden),
    }
    # MAE decoder-side pieces used by forward_decoder_img
    params['decoder_embed'] = _linear_params(ks[8], embed_dim, decoder_embed_dim)
    params['mask_token'] = 0.02 * jax.random.normal(ks[9], (1, 1, decoder_embed_dim), jnp.float32)
    params['decoder_pos_embed'] = 0.02 * jax.random.normal(
        ks[10], (1, num_patches + 1, decoder_embed_dim), jnp.float32)
    # pts_decode: Linear(hidden*4 -> decoder_embed_dim)
    params['pts_decode'] = _linear_params(ks[11], hidden * 4, decoder_embed_dim)
    # img_conv: Conv2d(embed, embed*256, 1) + Rearrange + Conv2d(embed, hidden, 1)
    params['img_conv1'] = _linear_params(ks[12], embed_dim, embed_dim * 16 * 16)
    params['img_conv2'] = _linear_params(ks[13], embed_dim, hidden)
    return params


# ----------------------------------------------------------------------------
# Module forwards (glue + Pallas kernel calls)
# ----------------------------------------------------------------------------
def point_encoder_forward(pe, features, data_dict, scale=2):
    """point_encoder.forward(features, data_dict, sample_points=False)."""
    coors = np.asarray(data_dict['spconv_points_coors'])             # (N, 4) int
    keys = np.concatenate([coors[:, 0:1], coors[:, 1:] // scale], axis=1)
    uniq, inv = np.unique(keys, axis=0, return_inverse=True)
    inv = jnp.asarray(np.asarray(inv).reshape(-1), jnp.int32)
    m = int(uniq.shape[0])

    features = jnp.asarray(features, jnp.float32)

    # downsample: scatter_mean over points -> coarse voxels
    down = segment_mean(features, inv, m)                            # (M, C)

    # PPmodel: 3 fused layers, BN affines folded into the next layer's weights.
    # bf16 output — it only feeds the next matmul and halves the gather traffic.
    hpp = fused_mlp(down, [
        dict(w=pe['pp0']['w'], b=pe['pp0']['b'], act=True,
             bn_scale=pe['bn0']['scale'], bn_shift=pe['bn0']['shift']),
        dict(w=pe['pp1']['w'], b=pe['pp1']['b'], act=True,
             bn_scale=pe['bn1']['scale'], bn_shift=pe['bn1']['shift']),
        dict(w=pe['pp2']['w'], b=pe['pp2']['b'], act=True),
    ], out_dtype=jnp.bfloat16)

    coors_inv_full = jnp.asarray(data_dict['spconv_points_coors_inv'], jnp.int32)
    comp = jnp.take(inv, coors_inv_full, axis=0)     # composed index: inv[coors_inv_full]
    # TODO(synk): fold these two row gathers into the fused kernel's input DMA
    #             (scalar-prefetched indices + per-row manual DMA); they are
    #             the only remaining XLA passes on this path.
    feat_g = jnp.take(features, coors_inv_full, axis=0)              # (Nf, C) f32
    hpp_g = jnp.take(hpp, comp, axis=0)                              # (Nf, C) bf16

    # layer_in + concat + layer_out fused into ONE pallas_call
    out = pe_layer_out_fused(feat_g, hpp_g, pe)                      # (Nf, C) f32

    sk = f'spconv_points_scale_{scale}'
    v_feat = segment_mean(out, jnp.asarray(data_dict[sk]['coors_inv'], jnp.int32),
                          int(data_dict[sk]['num_voxels']))

    data_dict['spconv_points_coors'] = data_dict[sk]['coors']
    data_dict['spconv_points_coors_inv'] = data_dict[sk]['coors_inv']
    data_dict['spconv_points_full_coors'] = data_dict[sk]['full_coors']
    return v_feat


def forward_decoder_img(params, x, ids_restore):
    """SPVCNN_MAE.forward_decoder_img."""
    b, lk1, e = x.shape
    d = params['decoder_embed']['w'].shape[1]
    x = fused_linear(x.reshape(b * lk1, e),
                     params['decoder_embed']['w'], params['decoder_embed']['b'])
    x = x.reshape(b, lk1, d)
    l_full = ids_restore.shape[1]
    mask_tokens = jnp.broadcast_to(params['mask_token'], (b, l_full + 1 - lk1, d))
    x_ = jnp.concatenate([x[:, 1:, :], mask_tokens], axis=1)
    idx = jnp.broadcast_to(ids_restore[:, :, None].astype(jnp.int32), (b, l_full, d))
    x_ = jnp.take_along_axis(x_, idx, axis=1)
    x = jnp.concatenate([x[:, :1, :], x_], axis=1)
    x = x + params['decoder_pos_embed']
    return x[:, 1:, :]


def img_conv_forward(params, x, hidden=64, s0=16, s1=16):
    """img_conv: Conv2d1x1 -> Rearrange -> Conv2d1x1, algebraically fused.

    For each sub-pixel (i, j) the composite is a single (embed -> hidden)
    linear; stacking over (i, j, out) gives ONE lane-dense
    (embed -> s0*s1*hidden) linear.  The conv1 intermediate never exists.
    Output is bf16 (mem-bound tensor); the final NCHW relayout is done in bf16.
    x is NCHW patch features (PyTorch convention).
    """
    b, e, h, w = x.shape
    w1 = jnp.asarray(params['img_conv1']['w'], jnp.float32)          # (e, e*s0*s1)
    b1 = jnp.asarray(params['img_conv1']['b'], jnp.float32)
    w2 = jnp.asarray(params['img_conv2']['w'], jnp.float32)          # (e, hidden)
    b2 = jnp.asarray(params['img_conv2']['b'], jnp.float32)

    w1r = w1.reshape(e, e, s0, s1)                                   # (e_in, c, i, j)
    wc = jnp.einsum('ecij,co->eijo', w1r, w2).reshape(e, s0 * s1 * hidden)
    b1r = b1.reshape(e, s0, s1)
    bc = (jnp.einsum('cij,co->ijo', b1r, w2) + b2[None, None, :]).reshape(s0 * s1 * hidden)

    xr = jnp.transpose(x, (0, 2, 3, 1)).reshape(b * h * w, e)        # rows of patches
    # row 512 x col 4096 keeps double-buffered blocks well inside v7x's 64 MiB VMEM
    y = fused_linear(xr, wc, bc, act=False, row_tile=512, col_tile=4096,
                     out_dtype=jnp.bfloat16)
    # TODO(synk): the NCHW relayout below is unavoidable with row=(b,h,w) /
    #             col=(i,j,o) kernel tiling; fuse it into the downstream
    #             consumer if one is added.
    y = y.reshape(b, h, w, s0, s1, hidden)
    y = jnp.transpose(y, (0, 5, 1, 3, 2, 4)).reshape(b, hidden, h * s0, w * s1)
    return y


def spvcnn_mae_forward(batch_dict):
    """SPVCNN_MAE.forward is an identity over batch_dict."""
    return batch_dict


# ----------------------------------------------------------------------------
# Demo
# ----------------------------------------------------------------------------
if __name__ == "__main__":
    key = jax.random.PRNGKey(0)
    k_par, k_feat, k_coor, k_cinv, k_cinv2, k_img, k_x, k_ids, k_pts = jax.random.split(key, 9)

    HIDDEN = 64
    EMBED_DIM = 32
    DEC_EMBED_DIM = 32
    N_PTS = 32          # voxelized points at current scale
    N_FULL = 48         # full-resolution points
    M2 = 16             # voxels at scale 2
    B = 2
    IMG_H = IMG_W = 32  # small image; patch 16 -> 2x2 = 4 patches
    L = (IMG_H // 16) * (IMG_W // 16)
    L_KEEP = max(1, int(L * (1 - 0.75)))   # img_mask_ratio = 0.75

    params = build_params(k_par, hidden=HIDDEN, embed_dim=EMBED_DIM,
                          decoder_embed_dim=DEC_EMBED_DIM, num_patches=L)

    # ---- synthetic sparse-point batch_dict ---------------------------------
    features = jax.random.normal(k_feat, (N_PTS, HIDDEN), jnp.float32)
    coors = jax.random.randint(k_coor, (N_PTS, 4), 0, 8).astype(jnp.int32)
    coors = coors.at[:, 0].set(jax.random.randint(k_coor, (N_PTS,), 0, B))
    coors_inv_full = jax.random.randint(k_cinv, (N_FULL,), 0, N_PTS).astype(jnp.int32)
    cinv_s2 = jnp.concatenate([jnp.arange(M2, dtype=jnp.int32),
                               jax.random.randint(k_cinv2, (N_FULL - M2,), 0, M2).astype(jnp.int32)])
    batch_dict = {
        'batch_size': B,
        'spconv_points_coors': coors,
        'spconv_points_coors_inv': coors_inv_full,
        'spconv_points_scale_2': {
            'coors_inv': cinv_s2,
            'coors': jax.random.randint(k_coor, (M2, 4), 0, 4).astype(jnp.int32),
            'full_coors': jax.random.randint(k_coor, (N_FULL, 4), 0, 8).astype(jnp.int32),
            'num_voxels': M2,
        },
    }

    # Top-level forward (identity on batch_dict, per the PyTorch module).
    batch_dict = spvcnn_mae_forward(batch_dict)

    # point_encoder hot path (fused Pallas MLP chains + segment means)
    v_feat = point_encoder_forward(params['pe'], features, batch_dict, scale=2)

    # forward_decoder_img hot path
    x_enc = jax.random.normal(k_x, (B, L_KEEP + 1, EMBED_DIM), jnp.float32)
    ids_restore = jnp.stack([jax.random.permutation(jax.random.fold_in(k_ids, i), L)
                             for i in range(B)]).astype(jnp.int32)
    dec_tokens = forward_decoder_img(params, x_enc, ids_restore)

    # pts_decode
    pts_feat_cat = jax.random.normal(k_pts, (M2, HIDDEN * 4), jnp.float32)
    pts_dec = fused_linear(pts_feat_cat, params['pts_decode']['w'], params['pts_decode']['b'])

    # maxpool (small 3-channel image, NCHW) and img_conv (patch features)
    img = jax.random.normal(k_img, (B, 3, IMG_H, IMG_W), jnp.float32)
    pooled = maxpool2d_nchw(img, k=16)
    patch_feat = jax.random.normal(k_img, (B, EMBED_DIM, IMG_H // 16, IMG_W // 16), jnp.float32)
    img_feats = img_conv_forward(params, patch_feat, hidden=HIDDEN)

    results = (v_feat, dec_tokens, pts_dec, pooled, img_feats)
    jax.block_until_ready(results)

    assert v_feat.shape == (M2, HIDDEN)
    assert dec_tokens.shape == (B, L, DEC_EMBED_DIM)
    assert pts_dec.shape == (M2, DEC_EMBED_DIM)
    assert pooled.shape == (B, 3, IMG_H // 16, IMG_W // 16)
    assert img_feats.shape == (B, HIDDEN, IMG_H, IMG_W)
    print("KERNEL_OK")
</pallas_src>

<mosaic_0001>
module attributes {stable_mosaic.version = 11 : i64} {
  func.func @_mlp_kernel(%arg0: i32, %arg1: memref<16x64xf32, #tpu.memory_space<vmem>>, %arg2: memref<64x32xbf16, #tpu.memory_space<vmem>>, %arg3: memref<1x32xf32, #tpu.memory_space<vmem>>, %arg4: memref<32x32xbf16, #tpu.memory_space<vmem>>, %arg5: memref<1x32xf32, #tpu.memory_space<vmem>>, %arg6: memref<32x64xbf16, #tpu.memory_space<vmem>>, %arg7: memref<1x64xf32, #tpu.memory_space<vmem>>, %arg8: memref<16x64xbf16, #tpu.memory_space<vmem>>) attributes {dimension_semantics = [#tpu.dimension_semantics<parallel>], iteration_bounds = array<i64: 2>, scalar_prefetch = 0 : i64, scratch_operands = 0 : i64, tpu.core_type = #tpu.core_type<tc>, window_params = [{transform_indices = @transform_0, window_bounds = array<i64: 16, 64>}, {pipeline_mode = #tpu.pipeline_mode<synchronous>, transform_indices = @transform_1, window_bounds = array<i64: 64, 32>}, {pipeline_mode = #tpu.pipeline_mode<synchronous>, transform_indices = @transform_2, window_bounds = array<i64: 1, 32>}, {pipeline_mode = #tpu.pipeline_mode<synchronous>, transform_indices = @transform_3, window_bounds = array<i64: 32, 32>}, {pipeline_mode = #tpu.pipeline_mode<synchronous>, transform_indices = @transform_4, window_bounds = array<i64: 1, 32>}, {pipeline_mode = #tpu.pipeline_mode<synchronous>, transform_indices = @transform_5, window_bounds = array<i64: 32, 64>}, {pipeline_mode = #tpu.pipeline_mode<synchronous>, transform_indices = @transform_6, window_bounds = array<i64: 1, 64>}, {transform_indices = @transform_7, window_bounds = array<i64: 16, 64>}]} {
    %c0 = arith.constant 0 : index
    %c0_0 = arith.constant 0 : index
    %0 = vector.load %arg1[%c0, %c0_0] : memref<16x64xf32, #tpu.memory_space<vmem>>, vector<16x64xf32>
    %1 = arith.truncf %0 : vector<16x64xf32> to vector<16x64xbf16>
    %c0_1 = arith.constant 0 : index
    %c0_2 = arith.constant 0 : index
    %2 = vector.load %arg2[%c0_1, %c0_2] : memref<64x32xbf16, #tpu.memory_space<vmem>>, vector<64x32xbf16>
    %cst = arith.constant dense<0.000000e+00> : vector<16x32xf32>
    %3 = tpu.matmul %1, %2, %cst {dimension_numbers = #tpu.dot_dimension_numbers<[1], [0], [0], [1], [0, 0, 1, 1], [], []>} : vector<16x64xbf16>, vector<64x32xbf16>, vector<16x32xf32> -> vector<16x32xf32>
    %c0_3 = arith.constant 0 : index
    %c0_4 = arith.constant 0 : index
    %4 = vector.load %arg3[%c0_3, %c0_4] : memref<1x32xf32, #tpu.memory_space<vmem>>, vector<1x32xf32>
    %5 = vector.broadcast %4 : vector<1x32xf32> to vector<16x32xf32>
    %6 = arith.addf %3, %5 : vector<16x32xf32>
    %cst_5 = arith.constant 0.000000e+00 : f32
    %7 = vector.broadcast %cst_5 : f32 to vector<16x32xf32>
    %8 = arith.cmpf oge, %6, %7 : vector<16x32xf32>
    %cst_6 = arith.constant 1.000000e-01 : f32
    %9 = vector.broadcast %cst_6 : f32 to vector<16x32xf32>
    %10 = arith.mulf %9, %6 : vector<16x32xf32>
    %11 = arith.select %8, %6, %10 : vector<16x32xi1>, vector<16x32xf32>
    %12 = arith.truncf %11 : vector<16x32xf32> to vector<16x32xbf16>
    %c0_7 = arith.constant 0 : index
    %c0_8 = arith.constant 0 : index
    %13 = vector.load %arg4[%c0_7, %c0_8] : memref<32x32xbf16, #tpu.memory_space<vmem>>, vector<32x32xbf16>
    %cst_9 = arith.constant dense<0.000000e+00> : vector<16x32xf32>
    %14 = tpu.matmul %12, %13, %cst_9 {dimension_numbers = #tpu.dot_dimension_numbers<[1], [0], [0], [1], [0, 0, 1, 1], [], []>} : vector<16x32xbf16>, vector<32x32xbf16>, vector<16x32xf32> -> vector<16x32xf32>
    %c0_10 = arith.constant 0 : index
    %c0_11 = arith.constant 0 : index
    %15 = vector.load %arg5[%c0_10, %c0_11] : memref<1x32xf32, #tpu.memory_space<vmem>>, vector<1x32xf32>
    %16 = vector.broadcast %15 : vector<1x32xf32> to vector<16x32xf32>
    %17 = arith.addf %14, %16 : vector<16x32xf32>
    %cst_12 = arith.constant 0.000000e+00 : f32
    %18 = vector.broadcast %cst_12 : f32 to vector<16x32xf32>
    %19 = arith.cmpf oge, %17, %18 : vector<16x32xf32>
    %cst_13 = arith.constant 1.000000e-01 : f32
    %20 = vector.broadcast %cst_13 : f32 to vector<16x32xf32>
    %21 = arith.mulf %20, %17 : vector<16x32xf32>
    %22 = arith.select %19, %17, %21 : vector<16x32xi1>, vector<16x32xf32>
    %23 = arith.truncf %22 : vector<16x32xf32> to vector<16x32xbf16>
    %c0_14 = arith.constant 0 : index
    %c0_15 = arith.constant 0 : index
    %24 = vector.load %arg6[%c0_14, %c0_15] : memref<32x64xbf16, #tpu.memory_space<vmem>>, vector<32x64xbf16>
    %cst_16 = arith.constant dense<0.000000e+00> : vector<16x64xf32>
    %25 = tpu.matmul %23, %24, %cst_16 {dimension_numbers = #tpu.dot_dimension_numbers<[1], [0], [0], [1], [0, 0, 1, 1], [], []>} : vector<16x32xbf16>, vector<32x64xbf16>, vector<16x64xf32> -> vector<16x64xf32>
    %c0_17 = arith.constant 0 : index
    %c0_18 = arith.constant 0 : index
    %26 = vector.load %arg7[%c0_17, %c0_18] : memref<1x64xf32, #tpu.memory_space<vmem>>, vector<1x64xf32>
    %27 = vector.broadcast %26 : vector<1x64xf32> to vector<16x64xf32>
    %28 = arith.addf %25, %27 : vector<16x64xf32>
    %cst_19 = arith.constant 0.000000e+00 : f32
    %29 = vector.broadcast %cst_19 : f32 to vector<16x64xf32>
    %30 = arith.cmpf oge, %28, %29 : vector<16x64xf32>
    %cst_20 = arith.constant 1.000000e-01 : f32
    %31 = vector.broadcast %cst_20 : f32 to vector<16x64xf32>
    %32 = arith.mulf %31, %28 : vector<16x64xf32>
    %33 = arith.select %30, %28, %32 : vector<16x64xi1>, vector<16x64xf32>
    %34 = arith.truncf %33 : vector<16x64xf32> to vector<16x64xbf16>
    %c0_21 = arith.constant 0 : index
    %c0_22 = arith.constant 0 : index
    %35 = vector.load %arg8[%c0_21, %c0_22] : memref<16x64xbf16, #tpu.memory_space<vmem>>, vector<16x64xbf16>
    tpu.vector_store %arg8[%c0_21, %c0_22], %34 {strides = array<i32>} : memref<16x64xbf16, #tpu.memory_space<vmem>>, vector<16x64xbf16>,
    return
  }
  func.func @transform_0(%arg0: i32) -> (i32, i32) {
    %c0_i32 = arith.constant 0 : i32
    %c0_i32_0 = arith.constant 0 : i32
    return %arg0, %c0_i32 : i32, i32
  }
  func.func @transform_1(%arg0: i32) -> (i32, i32) {
    %c0_i32 = arith.constant 0 : i32
    %c0_i32_0 = arith.constant 0 : i32
    %c0_i32_1 = arith.constant 0 : i32
    return %c0_i32, %c0_i32_0 : i32, i32
  }
  func.func @transform_2(%arg0: i32) -> (i32, i32) {
    %c0_i32 = arith.constant 0 : i32
    %c0_i32_0 = arith.constant 0 : i32
    %c0_i32_1 = arith.constant 0 : i32
    return %c0_i32, %c0_i32_0 : i32, i32
  }
  func.func @transform_3(%arg0: i32) -> (i32, i32) {
    %c0_i32 = arith.constant 0 : i32
    %c0_i32_0 = arith.constant 0 : i32
    %c0_i32_1 = arith.constant 0 : i32
    return %c0_i32, %c0_i32_0 : i32, i32
  }
  func.func @transform_4(%arg0: i32) -> (i32, i32) {
    %c0_i32 = arith.constant 0 : i32
    %c0_i32_0 = arith.constant 0 : i32
    %c0_i32_1 = arith.constant 0 : i32
    return %c0_i32, %c0_i32_0 : i32, i32
  }
  func.func @transform_5(%arg0: i32) -> (i32, i32) {
    %c0_i32 = arith.constant 0 : i32
    %c0_i32_0 = arith.constant 0 : i32
    %c0_i32_1 = arith.constant 0 : i32
    return %c0_i32, %c0_i32_0 : i32, i32
  }
  func.func @transform_6(%arg0: i32) -> (i32, i32) {
    %c0_i32 = arith.constant 0 : i32
    %c0_i32_0 = arith.constant 0 : i32
    %c0_i32_1 = arith.constant 0 : i32
    return %c0_i32, %c0_i32_0 : i32, i32
  }
  func.func @transform_7(%arg0: i32) -> (i32, i32) {
    %c0_i32 = arith.constant 0 : i32
    %c0_i32_0 = arith.constant 0 : i32
    return %arg0, %c0_i32 : i32, i32
  }
}

</mosaic_0001>

<bundles_post_ra>
// kernel: tpu_custom_call.1
= control target key start
LH: loop header
LB: loop body
LE: loop exit
PB: predicated region body
PF: predicated region fallthrough
CT: control target
= control target key end

     0   :  { %12 = vsyncpa [#allocation3], 0  ;;  %s1064_s0 = inlined_call_operand.vmem [shape: f32[31,64], index: 0, kind: input, shape index: {}]   ;;  %s1065_s1 = inlined_call_operand.vmem [shape: bf16[64,32], index: 1, kind: input, shape index: {}]   ;;  %s1066_s2 = inlined_call_operand.vmem [shape: f32[1,32], index: 2, kind: input, shape index: {}]   ;;  %s1067_s3 = inlined_call_operand.vmem [shape: bf16[32,32], index: 3, kind: input, shape index: {}]   ;;  %s1068_s4 = inlined_call_operand.vmem [shape: f32[1,32], index: 4, kind: input, shape index: {}]   ;;  %s1069_s5 = inlined_call_operand.hbm [shape: bf16[32,64], index: 5, kind: input, shape index: {}]   ;;  %s1070_s6 = inlined_call_operand.vmem [shape: f32[1,64], index: 6, kind: input, shape index: {}]   ;;  %s1071_s7 = inlined_call_operand.hbm [shape: bf16[31,64], index: 7, kind: output, shape index: {}]  }
   0x1   :  { %13 = vsyncpa [#allocation4], 0 }
   0x2   :  { %15 = vsyncpa [#allocation4 + $0x1], 0  ;;  %s913_s24 = smov 0   ;;  %s915_s25 = smov 0  }
   0x3   :  { %s917_s26 = smov 0   ;;  %s919_s27 = smov 0  }
   0x4 LB: > { %s934_s28 = sadd.s32 4294967295, %s863_s27   ;;  %s637_s29 = sadd.s32 4294967294, %s863_s27   ;;  %s863_s27 = sphi %s919_s27, %s1079_s27   ;;  %s859_s26 = sphi %s917_s26, %s1078_s26   ;;  %s855_s25 = sphi %s915_s25, %s1077_s25   ;;  %s851_s24 = sphi %s913_s24, %s1076_s24  }
   0x5   : > { %s938_s30 = sadd.s32 1, %s863_s27   ;;  %s180_s8 = sadd.s32 1, %s859_s26 }
   0x6   : > { %s177_s9 = ssub.s32 %s863_s27, %s938_s30  ;;  %p190_p0 = scmp.ne.s32.totalorder %s859_s26, %s855_s25 }
   0x7   : > { %p178_p1 = scmp.eq.s32.totalorder %s177_s9, 0  ;;  %p191_p2 = scmp.eq.s32.totalorder %s934_s28, 1 }
   0x8   : > { %p196_p3 = scmp.ne.s32.totalorder %s855_s25, %s851_s24  ;;  %p197_p4 = scmp.eq.s32.totalorder %s637_s29, 1 }
   0x9   : > { %s949_s10 = scalar_select %p178_p1, %s859_s26, %s180_s8  }
   0xa   : > { %p951_p5 = por %p191_p2, %p190_p0  ;;  %p955_p6 = por %p197_p4, %p196_p3 }
   0xb   : > { %p638_p7 = scmp.ge.s32.totalorder %s863_s27, 1  ;;  %p204_p8 = scmp.lt.s32.totalorder %s863_s27, 3 }
   0xc   : > { %s1073_s12 = scalar_select %p955_p6, 1, 0 }
   0xd   : > { %p723_p9 = scmp.eq.s32.totalorder %s934_s28, 0  ;;  %p962_p10 = pnand %p638_p7, %p204_p8 }
   0xe   : > { %s865_s14 = smov [#allocation2]  }
   0xf   : > { %s228_s15 = sshll.u32 %s865_s14, 4  ;;  %p715_p11 = pneg %p962_p10  ;;  %s229_s15 = int_to_ptr.vmem [resolvable:$true] %s228_s15 }
  0x10   : > { %s784_s16 = scalar_lea.vmem %s229_s15, 256  ;;  %p792_p3 = scmp.lt.s32.totalorder %s229_s15, %s229_s15 }
  0x11   : > { %p716_p12 = pnand %p723_p9, %p715_p11  ;;  %p785_p0 = scmp.ne.s32.totalorder %s229_s15, %s784_s16 }
  0x12   : > { %p793_p4 = scmp.lt.s32.totalorder %s784_s16, %s784_s16 }
  0x13   : > { %p775_p13 = pneg %p716_p12 }
  0x14   : > { %p794_p6 = por %p793_p4, %p792_p3 }
  0x15   : > { %p787_p1 = pnand %p785_p0, %p775_p13 }
  0x17   : > { %p788_p2 = pneg %p787_p1 }
  0x19   : > { %p795_p7 = pnand %p794_p6, %p788_p2 }
  0x1b   : > { %798 = shalt.err (!%p795_p7)
}
  0x1c   : > { %s866_s17 = smov 64   ;;  %s867_s18 = smov 4  }
  0x1d   : > { %718 = dma.hbm_to_vmem [thread:$0]  (!%p716_p12), %s1069_s5, 256, %s229_s15, [#allocation3], %s866_s17, %s866_s17, %s867_s18  }
  0x1e   : > { %256 = sbr.rel (%p962_p10) target bundleno = 680 (0x2a8), region = 48 }
  0x23   : > { %842 = dma.done.wait (%p723_p9), [#allocation3], 256  }
  0x24   : > { %844 = vsyncadd (%p723_p9), [#allocation3], 4294967040  ;;  %s644_s21 = sshll.u32 %s934_s28, 1  ;;  %v868_v0 = vmov 0.0   ;;  %vm869_vm0 = vmmov 0   ;;  %v765_v1 = vld [vmem:[%s1065_s1 + $0x18] sm:$0xff]  }
  0x25   : > { %681 = vmatprep.subr.bf16.mxu0 %v868_v0  ;;  %689 = vmatprep.mubr.msk.bf16.mxu0 %vm869_vm0, %v868_v0  ;;  %p289_p6 = scmp.lt.s32.totalorder %s644_s21, 3  ;;  %v766_v2 = vld [vmem:[%s1065_s1 + $0x10] sm:$0xff]   ;;  %v767_v3 = vld [vmem:[%s1065_s1 + $0x8] sm:$0xff]   ;;  %v768_v4 = vld [vmem:[%s1065_s1] sm:$0xff]   ;;  %vm338_vm1 = vcmask 523264   ;;  %vm413_vm4 = vcmask 261120  }
  0x26   : > { %693 = vmatprep.subr.bf16.mxu1 %v868_v0  ;;  %697 = vmatprep.mubr.msk.bf16.mxu1 %vm869_vm0, %v868_v0  ;;  %v769_v8 = vld [vmem:[%s1067_s3 + $0x8] sm:$0xff]   ;;  %v770_v9 = vld [vmem:[%s1067_s3] sm:$0xff]   ;;  %s285_s16 = sand.u32 1, %s855_s25   ;;  %vm546_vm8 = vcmask 519168   ;;  %s669_s18 = sshll.u32 %s934_s28, 7 }
  0x27   : > { %s1081_s21 = smov (!%p289_p6, %s644_s21), 3  ;;  %682 = vmatpush3.bf16.msra.mxu0 %v765_v1  ;;  %694 = vmatpush3.bf16.msra.mxu1 %v769_v8  ;;  %v646_v10 = vld [vmem:[%s1066_s2] ss:$0 sm:$0xff]  ;;  %v771_v22 = vld [vmem:[#allocation2 + $0x8] sm:$0xff]   ;;  %s1020_s23 = scalar_lea.hbm %s1071_s7, %s669_s18 }
  0x28   : > { %683 = vmatprep.subr.bf16.mxu0 %v868_v0  ;;  %s645_s14 = sshll.u32 %s1081_s21, 3  ;;  %695 = vmatprep.subr.bf16.mxu1 %v868_v0  ;;  %v772_v23 = vld [vmem:[#allocation2] sm:$0xff]   ;;  %s1024_s29 = scalar_lea.sflag [#allocation4], %s285_s16 }
  0x29   : > { %s292_s17 = scalar_lea.vmem %s1064_s0, %s645_s14  ;;  %v652_v24 = vld [vmem:[%s1068_s4] ss:$0 sm:$0xff]  ;;  %s870_s8 = smov [#allocation5]  }
  0x2a   : > { %v296_v5 = vld [vmem:[%s292_s17] sm:$0xff]  ;;  %v297_v6 = vld [vmem:[%s292_s17 + $0x8] sm:$0xff]  ;;  %s643_s17 = sshll.u32 %s285_s16, 3  ;;  %s803_s9 = sshll.u32 %s870_s8, 4  ;;  %s804_s9 = int_to_ptr.vmem [resolvable:$false] %s803_s9 }
  0x2b   : > { %684 = vmatpush3.bf16.msra.mxu0 %v766_v2  ;;  %v298_v7 = vpack.c.bf16 %v297_v6, %v296_v5  ;;  %696 = vmatpush3.bf16.msra.mxu1 %v770_v9  ;;  %v656_v36 = vld [vmem:[%s1070_s6] ss:$0 sm:$0xff]  ;;  %s287_s19 = scalar_lea.vmem [#allocation5], %s643_s17  ;;  %s805_s13 = scalar_lea.vmem %s804_s9, 256 }
  0x2c   : > { %685 = vmatprep.subr.bf16.mxu0 %v868_v0  ;;  %701 = vmatprep.subr.bf16.mxu1 %v868_v0  ;;  %s563_s20 = sshll.u32 %s287_s19, 4  ;;  %s1022_s20 = int_to_ptr.vmem [resolvable:$true] %s563_s20 }
  0x2d   : > { %s799_s28 = scalar_lea.vmem %s1022_s20, 128  ;;  %p806_p11 = scmp.lt.s32.totalorder %s1022_s20, %s804_s9 }
  0x2e   : > { %p800_p8 = scmp.ne.s32.totalorder %s1022_s20, %s799_s28  ;;  %p807_p12 = scmp.lt.s32.totalorder %s805_s13, %s799_s28 }
  0x2f   : > { %686 = vmatpush3.bf16.msra.mxu0 %v767_v3 }
  0x30   : > { %687 = vmatprep.subr.bf16.mxu0 %v868_v0  ;;  %p801_p9 = pnand %p800_p8, %p951_p5  ;;  %p808_p13 = por %p807_p12, %p806_p11 }
  0x32   : > { %p802_p10 = pneg %p801_p9 }
  0x33   : > { %688 = vmatpush3.bf16.msra.mxu0 %v768_v4 }
  0x34   : > { %p809_p0 = pnand %p808_p13, %p802_p10 }
  0x36   : > { %690 = vmatmul.mubr.msk.bf16.vlgmr.msra.gmra.mxu0 %vm338_vm1, %v298_v7 }
  0xf6   : > { %v376_v11 = vpop.f32.mrf.mxu0 }
  0xf7   : > { %v377_v12 = vadd.f32 %v646_v10, %v376_v11 }
  0xf8   : > { %v691_v13 = vpop.f32.mrf.mxu0 }
  0xf9   : > { %v385_v15 = vmul.f32 0.1, %v377_v12  ;;  %vm383_vm2 = vcmp.ge.f32.partialorder %v377_v12, 0.0 }
  0xfa   : > { %v379_v14 = vpop.f32.mrf.mxu0 }
  0xfb   : > { %v380_v16 = vadd.f32 %v646_v10, %v379_v14  ;;  %v387_v19 = vsel %vm383_vm2, %v377_v12, %v385_v15 }
  0xfc   : > { %v692_v17 = vpop.f32.mrf.mxu0 }
  0xfd   : > { %vm384_vm3 = vcmp.ge.f32.partialorder %v380_v16, 0.0  ;;  %v386_v18 = vmul.f32 0.1, %v380_v16 }
  0xff   : > { %v388_v20 = vsel %vm384_vm3, %v380_v16, %v386_v18 }
 0x100   : > { %v389_v21 = vpack.c.bf16 %v388_v20, %v387_v19 }
 0x102   : > { %698 = vmatmul.mubr.msk.bf16.vlgmr.msra.gmra.mxu1 %vm413_vm4, %v389_v21 }
 0x103   : > { %705 = vmatprep.mubr.msk.bf16.mxu1 %vm869_vm0, %v868_v0  ;;  %702 = vmatpush3.bf16.msra.mxu1 %v771_v22 }
 0x104   : > { %703 = vmatprep.subr.bf16.mxu1 %v868_v0 }
 0x107   : > { %704 = vmatpush3.bf16.msra.mxu1 %v772_v23 }
 0x1c2   : > { %v451_v25 = vpop.f32.mrf.mxu1 }
 0x1c3   : > { %v452_v26 = vadd.f32 %v652_v24, %v451_v25 }
 0x1c4   : > { %v699_v27 = vpop.f32.mrf.mxu1 }
 0x1c5   : > { %v460_v29 = vmul.f32 0.1, %v452_v26  ;;  %vm458_vm5 = vcmp.ge.f32.partialorder %v452_v26, 0.0 }
 0x1c6   : > { %v454_v28 = vpop.f32.mrf.mxu1 }
 0x1c7   : > { %v455_v30 = vadd.f32 %v652_v24, %v454_v28  ;;  %v462_v33 = vsel %vm458_vm5, %v452_v26, %v460_v29 }
 0x1c8   : > { %v700_v31 = vpop.f32.mrf.mxu1 }
 0x1c9   : > { %vm459_vm6 = vcmp.ge.f32.partialorder %v455_v30, 0.0  ;;  %v461_v32 = vmul.f32 0.1, %v455_v30 }
 0x1cb   : > { %v463_v34 = vsel %vm459_vm6, %v455_v30, %v461_v32 }
 0x1cc   : > { %v464_v35 = vpack.c.bf16 %v463_v34, %v462_v33 }
 0x1ce   : > { %706 = vmatmul.mubr.msk.bf16.vlgmr.msra.gmra.mxu1 %vm413_vm4, %v464_v35 }
 0x28e   : > { %v525_v37 = vpop.f32.mrf.mxu1 }
 0x28f   : > { %v526_v38 = vadd.f32 %v656_v36, %v525_v37 }
 0x290   : > { %v707_v39 = vpop.f32.mrf.mxu1 }
 0x291   : > { %vm532_vm7 = vcmp.ge.f32.partialorder %v526_v38, 0.0  ;;  %v534_v40 = vmul.f32 0.1, %v526_v38 }
 0x292   : > { %v528_v41 = vpop.f32.mrf.mxu1 }
 0x293   : > { %v536_v42 = vsel %vm532_vm7, %v526_v38, %v534_v40  ;;  %v529_v43 = vadd.f32 %v656_v36, %v528_v41 }
 0x294   : > { %v667_v44 = vpack.c.bf16 %v536_v42, %v536_v42  ;;  %v708_v45 = vpop.f32.mrf.mxu1 }
 0x295   : > { %vm533_vm9 = vcmp.ge.f32.partialorder %v529_v43, 0.0  ;;  %v535_v46 = vmul.f32 0.1, %v529_v43 }
 0x296   : > { %547 = vst.msk [vmem:[%s287_s19] sm:$0xf] %vm546_vm8, %v667_v44 }
 0x297   : > { %v537_v47 = vsel %vm533_vm9, %v529_v43, %v535_v46 }
 0x298   : > { %v668_v48 = vpack.c.bf16 %v537_v47, %v537_v47 }
 0x29a   : > { %548 = vst.msk [vmem:[%s287_s19 + $0x4] sm:$0xf] %vm546_vm8, %v668_v48 }
 0x29b   : > { %812 = shalt.err (!%p809_p0)
}
 0x29c   : > { %s813_s14 = scalar_lea.hbm %s1020_s23, 128  ;;  %s817_s17 = scalar_lea.hbm %s1071_s7, 256 }
 0x29d   : > { %p814_p1 = scmp.ne.s32.totalorder %s1020_s23, %s813_s14  ;;  %p818_p4 = scmp.lt.s32.totalorder %s1020_s23, %s1071_s7 }
 0x29e   : > { %p819_p7 = scmp.lt.s32.totalorder %s817_s17, %s813_s14 }
 0x29f   : > { %p815_p2 = pnand %p814_p1, %p951_p5 }
 0x2a0   : > { %p820_p6 = por %p819_p7, %p818_p4 }
 0x2a1   : > { %p816_p3 = pneg %p815_p2 }
 0x2a3   : > { %p821_p8 = pnand %p820_p6, %p816_p3 }
 0x2a5   : > { %824 = shalt.err (!%p821_p8)
}
 0x2a6   : > { %s871_s21 = smov 64   ;;  %s872_s22 = smov 4  }
 0x2a7   : > { %713 = dma.vmem_to_hbm [thread:$0]  (%p951_p5), %s1022_s20, 128, %s1020_s23, %s1024_s29, %s871_s21, %s871_s21, %s872_s22  }
 0x2a8 PF: > { %p725_p9 = scmp.ge.s32.totalorder %s863_s27, 2  ;;  %s578_s28 = sand.u32 1, %s851_s24  }
 0x2a9   : > { %p1075_p10 = scmp.ne.s32.totalorder %s1073_s12, 0  ;;  %s579_s8 = scalar_lea.sflag [#allocation4], %s578_s28 }
 0x2ab   : > { %p720_p11 = pnand %p725_p9, %p1075_p10 }
 0x2ad   : > { %p721_p12 = pneg %p720_p11 }
 0x2af   : > { %846 = dma.done.wait (%p721_p12), %s579_s8, 128  }
 0x2b0   : > { %848 = vsyncadd (%p721_p12), %s579_s8, 4294967168  ;;  %p18_p13 = scmp.ge.s32.totalorder %s938_s30, 4   ;;  %s1076_s24 = smov %s855_s25 }
 0x2b1   : > { %s1077_s25 = smov %s859_s26  ;;  %s1078_s26 = smov %s949_s10 }
 0x2b2   : > { %s1079_s27 = smov %s938_s30  ;;  %20 = sbr.rel (!%p18_p13) target bundleno = 4 (0x4), region = 88 }
 0x2b7   :  { %584 = vsyncpa [#allocation3], 1 }
 0x2b8   :  { %586 = vsyncpa [#allocation3 + $0x1], 1 }
 0x2b9   :  { %587 = vsyncpa [#allocation4], 1 }
 0x2ba   :  { %589 = vsyncpa [#allocation4 + $0x1], 1 }

</bundles_post_ra>
